<compile_context>
chip_gen: v5e
topology: v5e:2x2
jax: 0.10.0
libtpu: 0.0.40
codegen_flags: <defaults>
</compile_context>

<pallas_src>
import functools

import jax
import jax.numpy as jnp
from jax.experimental import pallas as pl
from jax.experimental.pallas import tpu as pltpu

_TILE_BYTES = 4 * 1024 * 1024     # target physical VMEM bytes per logits buffer
_MAX_BLOCK_ROWS = 4096            # bounds the (bn,1) targets buffer (<= 2 MiB each)
_VMEM_LIMIT = 32 * 1024 * 1024    # cap only; worst-case usage here is ~12 MiB


def _round_up(x, m):
    return ((x + m - 1) // m) * m


def _cdiv(a, b):
    return -(-a // b)


def _num_tensorcores():
    """Best-effort TensorCore count (v7x: 2, v5e/v6e: 1). Defaults to 1.

    A wrong >1 answer only adds a harmless extra 'parallel' grid axis; it can
    never change results.
    """
    candidates = []
    try:
        candidates.append(pltpu.get_tpu_info())
    except Exception:
        pass
    try:
        candidates.append(jax.devices()[0])
    except Exception:
        pass
    for obj in candidates:
        for name in ("num_tensorcores", "tensorcore_count", "num_cores", "core_count"):
            try:
                v = getattr(obj, name, None)
            except Exception:
                v = None
            if isinstance(v, int) and 1 <= v <= 8:
                return v
    return 1


def _focal_modulate(ce, gamma):
    """(1 - exp(-ce)) ** gamma * ce, specialised on integer gamma at trace time."""
    g = float(gamma)
    if g == 0.0:
        return ce
    pt = jnp.exp(-ce)
    one_minus_pt = 1.0 - pt
    if g == int(g) and 0 < int(g) <= 8:
        w = one_minus_pt
        for _ in range(int(g) - 1):
            w = w * one_minus_pt
        return w * ce
    # Non-integer gamma: exp/log round trip.  The 1e-30 clamp only matters for
    # extremely confident predictions (pt -> 1) where the loss is ~0 anyway.
    w = jnp.where(one_minus_pt > 0.0,
                  jnp.exp(g * jnp.log(jnp.maximum(one_minus_pt, 1e-30))),
                  0.0)
    return w * ce


def _focal_kernel(logits_ref, targets_ref, out_ref, *,
                  gamma, n_rows, block_rows, steps_per_split):
    s = pl.program_id(0)      # core split ("parallel")
    i = pl.program_id(1)      # batch-tile step within the split ("arbitrary")

    @pl.when(i == 0)
    def _():
        out_ref[...] = jnp.zeros_like(out_ref)

    logits = logits_ref[...].astype(jnp.float32)           # (bn, C)
    targets = targets_ref[...]                             # (bn, 1) int32

    # Numerically stable logsumexp over the class (lane) axis.
    row_max = jnp.max(logits, axis=-1, keepdims=True)      # (bn, 1)
    lse = row_max + jnp.log(jnp.sum(jnp.exp(logits - row_max),
                                    axis=-1, keepdims=True))

    # Target-class logit via compare + select + sum (no f32 one-hot matmul).
    cols = jax.lax.broadcasted_iota(jnp.int32, logits.shape, 1)
    tgt_logit = jnp.sum(jnp.where(cols == targets, logits, 0.0),
                        axis=-1, keepdims=True)             # (bn, 1)

    ce = lse - tgt_logit
    loss = _focal_modulate(ce, gamma)                        # (bn, 1)

    # Ragged tail: the last block may read out-of-bounds garbage rows.  Mask by
    # the global row index derived from the program ids (no wrapper padding).
    base = (s * steps_per_split + i) * block_rows
    rows = base + jax.lax.broadcasted_iota(jnp.int32, loss.shape, 0)
    loss = jnp.where(rows < n_rows, loss, 0.0)

    # Scalar partial sum folded into the resident output block (the out block
    # index is constant across i, so it acts as the accumulator).
    out_ref[...] += jnp.sum(loss)


def _focal_loss_sum(logits, targets_col, gamma, max_block_rows):
    n, c = logits.shape
    itemsize = jnp.dtype(logits.dtype).itemsize
    sub = max(8, 32 // itemsize)                    # sublane granule for this dtype
    phys_row_bytes = _round_up(c, 128) * itemsize   # lane-padded VMEM row footprint

    bn = _TILE_BYTES // phys_row_bytes
    bn = min(bn, max_block_rows)
    bn = (bn // sub) * sub
    if bn < sub:
        # TODO(synk): vocab-scale C needs a streaming logsumexp over a class-tile
        # grid axis; fail explicitly instead of blowing the VMEM limit.
        raise NotImplementedError(f"num_classes={c} too large for a single VMEM class tile")
    if bn >= n:
        # Cover the whole batch: either one full-dim block or the largest
        # aligned block <= n (ragged remainder is a masked partial block).
        bn = n if (n % sub == 0 or n < sub) else (n // sub) * sub

    blocks_total = _cdiv(n, bn)
    splits = _num_tensorcores()
    if splits > 1 and blocks_total < 2 * splits:
        splits = 1                                  # too few tiles to be worth sharding
    steps = _cdiv(blocks_total, splits)
    last_block = blocks_total - 1

    def block_idx(s, i):
        # Clamp so a short last split never issues a fully out-of-bounds DMA;
        # the in-kernel row mask zeroes any re-read rows.
        return jnp.minimum(s * steps + i, last_block)

    kernel = functools.partial(_focal_kernel, gamma=float(gamma), n_rows=n,
                               block_rows=bn, steps_per_split=steps)

    out = pl.pallas_call(
        kernel,
        out_shape=jax.ShapeDtypeStruct((splits * 8, 128), jnp.float32),
        grid_spec=pltpu.PrefetchScalarGridSpec(
            num_scalar_prefetch=0,
            grid=(splits, steps),
            in_specs=[
                pl.BlockSpec((bn, c), lambda s, i: (block_idx(s, i), 0)),
                pl.BlockSpec((bn, 1), lambda s, i: (block_idx(s, i), 0)),
            ],
            out_specs=pl.BlockSpec((8, 128), lambda s, i: (s, 0)),
        ),
        compiler_params=pltpu.CompilerParams(
            dimension_semantics=("parallel", "arbitrary"),
            vmem_limit_bytes=_VMEM_LIMIT,
        ),
    )(logits, targets_col)
    return jnp.sum(out[::8, 0])                      # combine per-split partial sums


def focal_loss(logits, targets, *, gamma=2.0, reduction="mean",
               max_block_rows=_MAX_BLOCK_ROWS):
    """Focal loss matching the PyTorch module with alpha=None.

    ce = cross_entropy(logits, targets); pt = exp(-ce); loss = (1-pt)**gamma * ce.
    Accepts f32 or bf16 logits; math is done in f32 inside the kernel.
    """
    # TODO(synk): alpha (per-class weights) not implemented; module default is alpha=None.
    n, c = logits.shape
    targets_col = targets.astype(jnp.int32).reshape(n, 1)
    loss_sum = _focal_loss_sum(logits, targets_col, gamma, max_block_rows)

    if reduction == "mean":
        return loss_sum / jnp.float32(n)
    elif reduction == "sum":
        return loss_sum
    else:
        # TODO(synk): reduction='none' (per-sample losses) not exposed by this wrapper.
        raise NotImplementedError("reduction='none' not supported")


def _focal_loss_ref(logits, targets, gamma=2.0):
    logits = logits.astype(jnp.float32)
    lse = jax.scipy.special.logsumexp(logits, axis=-1)
    tgt_logit = jnp.take_along_axis(logits, targets[:, None].astype(jnp.int32), axis=-1)[:, 0]
    ce = lse - tgt_logit
    pt = jnp.exp(-ce)
    return jnp.mean((1.0 - pt) ** gamma * ce)


if __name__ == "__main__":
    key = jax.random.PRNGKey(0)
    k1, k2, k3, k4, k5, k6 = jax.random.split(key, 6)

    # Small-C case: batch=16, classes=8, single block.
    n1, c1 = 16, 8
    logits1 = jax.random.normal(k1, (n1, c1), dtype=jnp.float32)
    targets1 = jax.random.randint(k2, (n1,), 0, c1, dtype=jnp.int32)
    out1 = jax.block_until_ready(focal_loss(logits1, targets1, gamma=2.0, reduction="mean"))
    ref1 = _focal_loss_ref(logits1, targets1, gamma=2.0)
    assert jnp.allclose(out1, ref1, rtol=1e-5, atol=1e-6), (out1, ref1)

    # Larger-C (lane-dense) case: batch=24, classes=256.
    n2, c2 = 24, 256
    logits2 = jax.random.normal(k3, (n2, c2), dtype=jnp.float32)
    targets2 = jax.random.randint(k4, (n2,), 0, c2, dtype=jnp.int32)
    out2 = jax.block_until_ready(focal_loss(logits2, targets2, gamma=2.0, reduction="mean"))
    ref2 = _focal_loss_ref(logits2, targets2, gamma=2.0)
    assert jnp.allclose(out2, ref2, rtol=1e-5, atol=1e-6), (out2, ref2)

    # Multi-tile + ragged tail (no wrapper padding): batch=20, classes=8,
    # forced 8-row blocks -> 3 grid steps, last block partially out-of-bounds.
    n3, c3 = 20, 8
    logits3 = jax.random.normal(k5, (n3, c3), dtype=jnp.float32)
    targets3 = jax.random.randint(k6, (n3,), 0, c3, dtype=jnp.int32)
    out3 = jax.block_until_ready(
        focal_loss(logits3, targets3, gamma=2.0, reduction="mean", max_block_rows=8))
    ref3 = _focal_loss_ref(logits3, targets3, gamma=2.0)
    assert jnp.allclose(out3, ref3, rtol=1e-5, atol=1e-6), (out3, ref3)

    # bf16 logits (exercises dtype-aware tile sizing); math stays f32 in-kernel.
    logits4 = logits1.astype(jnp.bfloat16)
    out4 = jax.block_until_ready(focal_loss(logits4, targets1, gamma=2.0, reduction="sum"))
    ref4 = _focal_loss_ref(logits4, targets1, gamma=2.0) * n1
    assert jnp.allclose(out4, ref4, rtol=1e-4, atol=1e-5), (out4, ref4)

    print("KERNEL_OK")
</pallas_src>

<mosaic_0001>
module attributes {stable_mosaic.version = 11 : i64} {
  func.func @_focal_kernel(%arg0: i32, %arg1: i32, %arg2: memref<16x8xf32, #tpu.memory_space<vmem>>, %arg3: memref<16x1xi32, #tpu.memory_space<vmem>>, %arg4: memref<8x128xf32, #tpu.memory_space<vmem>>) attributes {dimension_semantics = [#tpu.dimension_semantics<parallel>, #tpu.dimension_semantics<arbitrary>], iteration_bounds = array<i64: 1, 1>, scalar_prefetch = 0 : i64, scratch_operands = 0 : i64, tpu.core_type = #tpu.core_type<tc>, window_params = [{transform_indices = @transform_0, window_bounds = array<i64: 16, 8>}, {transform_indices = @transform_1, window_bounds = array<i64: 16, 1>}, {transform_indices = @transform_2, window_bounds = array<i64: 8, 128>}]} {
    %c0_i32 = arith.constant 0 : i32
    %0 = arith.cmpi eq, %arg1, %c0_i32 : i32
    %1 = arith.extui %0 : i1 to i32
    %c0_i32_0 = arith.constant 0 : i32
    %2 = arith.cmpi ne, %1, %c0_i32_0 : i32
    scf.if %2 {
      %cst_16 = arith.constant 0.000000e+00 : f32
      %47 = vector.broadcast %cst_16 : f32 to vector<8x128xf32>
      %c0_17 = arith.constant 0 : index
      %c0_18 = arith.constant 0 : index
      %48 = vector.load %arg4[%c0_17, %c0_18] : memref<8x128xf32, #tpu.memory_space<vmem>>, vector<8x128xf32>
      tpu.vector_store %arg4[%c0_17, %c0_18], %47 {strides = array<i32>} : memref<8x128xf32, #tpu.memory_space<vmem>>, vector<8x128xf32>,
    } else {
    }
    %c0 = arith.constant 0 : index
    %c0_1 = arith.constant 0 : index
    %3 = vector.load %arg2[%c0, %c0_1] : memref<16x8xf32, #tpu.memory_space<vmem>>, vector<16x8xf32>
    %c0_2 = arith.constant 0 : index
    %c0_3 = arith.constant 0 : index
    %4 = vector.load %arg3[%c0_2, %c0_3] : memref<16x1xi32, #tpu.memory_space<vmem>>, vector<16x1xi32>
    %cst = arith.constant dense<0xFF800000> : vector<16xf32>
    %5 = vector.multi_reduction <maximumf>, %3, %cst [1] : vector<16x8xf32> to vector<16xf32>
    %6 = vector.shape_cast %5 : vector<16xf32> to vector<16x1xf32>
    %7 = vector.broadcast %6 : vector<16x1xf32> to vector<16x8xf32>
    %8 = arith.subf %3, %7 : vector<16x8xf32>
    %9 = math.exp %8 : vector<16x8xf32>
    %cst_4 = arith.constant dense<0.000000e+00> : vector<16xf32>
    %10 = vector.multi_reduction <add>, %9, %cst_4 [1] : vector<16x8xf32> to vector<16xf32>
    %11 = vector.shape_cast %10 : vector<16xf32> to vector<16x1xf32>
    %12 = math.log %11 : vector<16x1xf32>
    %13 = arith.addf %6, %12 : vector<16x1xf32>
    %14 = tpu.iota {dimensions = array<i32: 1>} : vector<16x8xi32>
    %15 = vector.broadcast %4 : vector<16x1xi32> to vector<16x8xi32>
    %16 = arith.cmpi eq, %14, %15 : vector<16x8xi32>
    %cst_5 = arith.constant 0.000000e+00 : f32
    %17 = vector.broadcast %cst_5 : f32 to vector<16x8xf32>
    %18 = arith.select %16, %3, %17 : vector<16x8xi1>, vector<16x8xf32>
    %cst_6 = arith.constant dense<0.000000e+00> : vector<16xf32>
    %19 = vector.multi_reduction <add>, %18, %cst_6 [1] : vector<16x8xf32> to vector<16xf32>
    %20 = vector.shape_cast %19 : vector<16xf32> to vector<16x1xf32>
    %21 = arith.subf %13, %20 : vector<16x1xf32>
    %cst_7 = arith.constant 0.000000e+00 : f32
    %22 = vector.broadcast %cst_7 : f32 to vector<16x1xf32>
    %23 = arith.subf %22, %21 : vector<16x1xf32>
    %24 = math.exp %23 : vector<16x1xf32>
    %cst_8 = arith.constant 1.000000e+00 : f32
    %25 = vector.broadcast %cst_8 : f32 to vector<16x1xf32>
    %26 = arith.subf %25, %24 : vector<16x1xf32>
    %27 = arith.mulf %26, %26 : vector<16x1xf32>
    %28 = arith.mulf %27, %21 : vector<16x1xf32>
    %c1_i32 = arith.constant 1 : i32
    %29 = arith.muli %arg0, %c1_i32 : i32
    %30 = arith.addi %29, %arg1 : i32
    %c16_i32 = arith.constant 16 : i32
    %31 = arith.muli %30, %c16_i32 : i32
    %32 = tpu.iota {dimensions = array<i32: 0>} : vector<16x1xi32>
    %33 = vector.broadcast %31 : i32 to vector<16x1xi32>
    %34 = arith.addi %33, %32 : vector<16x1xi32>
    %c16_i32_9 = arith.constant 16 : i32
    %35 = vector.broadcast %c16_i32_9 : i32 to vector<16x1xi32>
    %36 = arith.cmpi slt, %34, %35 : vector<16x1xi32>
    %cst_10 = arith.constant 0.000000e+00 : f32
    %37 = vector.broadcast %cst_10 : f32 to vector<16x1xf32>
    %38 = arith.select %36, %28, %37 : vector<16x1xi1>, vector<16x1xf32>
    %c0_11 = arith.constant 0 : index
    %c0_12 = arith.constant 0 : index
    %39 = vector.load %arg4[%c0_11, %c0_12] : memref<8x128xf32, #tpu.memory_space<vmem>>, vector<8x128xf32>
    %40 = vector.shape_cast %38 : vector<16x1xf32> to vector<1x16x1xf32>
    %cst_13 = arith.constant dense<0.000000e+00> : vector<1xf32>
    %41 = vector.multi_reduction <add>, %40, %cst_13 [1, 2] : vector<1x16x1xf32> to vector<1xf32>
    %42 = vector.shape_cast %41 : vector<1xf32> to vector<1x1x1xf32>
    %43 = vector.extract %42[0, 0, 0] : f32 from vector<1x1x1xf32>
    %44 = vector.broadcast %43 : f32 to vector<8x128xf32>
    %45 = arith.addf %39, %44 : vector<8x128xf32>
    %c0_14 = arith.constant 0 : index
    %c0_15 = arith.constant 0 : index
    %46 = vector.load %arg4[%c0_14, %c0_15] : memref<8x128xf32, #tpu.memory_space<vmem>>, vector<8x128xf32>
    tpu.vector_store %arg4[%c0_14, %c0_15], %45 {strides = array<i32>} : memref<8x128xf32, #tpu.memory_space<vmem>>, vector<8x128xf32>,
    return
  }
  func.func @transform_0(%arg0: i32, %arg1: i32) -> (i32, i32) {
    %c1_i32 = arith.constant 1 : i32
    %0 = arith.muli %arg0, %c1_i32 : i32
    %1 = arith.addi %0, %arg1 : i32
    %c0_i32 = arith.constant 0 : i32
    %2 = arith.minsi %1, %c0_i32 : i32
    %c0_i32_0 = arith.constant 0 : i32
    %c0_i32_1 = arith.constant 0 : i32
    return %2, %c0_i32_0 : i32, i32
  }
  func.func @transform_1(%arg0: i32, %arg1: i32) -> (i32, i32) {
    %c1_i32 = arith.constant 1 : i32
    %0 = arith.muli %arg0, %c1_i32 : i32
    %1 = arith.addi %0, %arg1 : i32
    %c0_i32 = arith.constant 0 : i32
    %2 = arith.minsi %1, %c0_i32 : i32
    %c0_i32_0 = arith.constant 0 : i32
    %c0_i32_1 = arith.constant 0 : i32
    return %2, %c0_i32_0 : i32, i32
  }
  func.func @transform_2(%arg0: i32, %arg1: i32) -> (i32, i32) {
    %c0_i32 = arith.constant 0 : i32
    %c0_i32_0 = arith.constant 0 : i32
    return %arg0, %c0_i32 : i32, i32
  }
}

</mosaic_0001>

<bundles_post_ra>
// kernel: tpu_custom_call.1
= control target key start
LH: loop header
LB: loop body
LE: loop exit
PB: predicated region body
PF: predicated region fallthrough
CT: control target
= control target key end

     0   :  { %vm85_vm0 = vcmask 64512   ;;  %v244_v3 = vmov 0   ;;  %s282_s0 = inlined_call_operand.vmem [shape: f32[16,8], index: 0, kind: input, shape index: {}]   ;;  %s283_s1 = inlined_call_operand.vmem [shape: s32[16,1], index: 1, kind: input, shape index: {}]   ;;  %s284_s2 = inlined_call_operand.hbm [shape: f32[8,128], index: 2, kind: output, shape index: {}]  }
   0x1   :  { %v81_v0 = vld [vmem:[%s282_s0] sm:$0xff]  ;;  %204 = vset.pattern.permute.xlu1 %v244_v3  ;;  %205 = vset.pattern.permute.xlu0 %v244_v3 }
   0x2   :  { %v83_v1 = vld [vmem:[%s283_s1] sm:$0xff]  ;;  %v86_v2 = vsel %vm85_vm0, %v81_v0, -inf }
   0x3   :  { %7 = vsyncpa [#allocation3], 0  ;;  %87 = vmax.xlane.f32.xlu0 %v86_v2  ;;  %113 = vperm.xlu1 %204, %v83_v1   ;;  %v82_v4 = vld [vmem:[%s282_s0 + $0x8] sm:$0xff]  ;;  %v110_v7 = vlaneseq  ;;  %vm155_vm3 = vcmask 7168   ;;  %s245_s0 = smov [#allocation2]   ;;  %s178_s19 = sshll.u32 %s284_s2, 4  ;;  %s179_s19 = int_to_ptr.hbm [resolvable:$true] %s178_s19 }
   0x4   :  { %v89_v5 = vsel %vm85_vm0, %v82_v4, -inf  ;;  %v84_v6 = vld [vmem:[%s283_s1 + $0x8] sm:$0xff]  ;;  %s176_s1 = sshll.u32 %s245_s0, 4  ;;  %s177_s1 = int_to_ptr.vmem [resolvable:$true] %s176_s1 }
   0x5   :  { %v111_v8 = vand.u32 127, %v110_v7 }
   0xb   :  { %90 = vmax.xlane.f32.xlu0 %v89_v5  ;;  %116 = vperm.xlu1 %204, %v84_v6  }
  0x75   :  { %v114_v9 = vpop.permute.xlu1 %113 }
  0x76   :  { %v88_v10 = vpop.xlane.xlu0 %87  ;;  %vm118_vm1 = vcmp.eq.s32.totalorder %v111_v8, %v114_v9 }
  0x77   :  { %v92_v11 = vsub.f32 %v81_v0, %v88_v10  ;;  %v120_v12 = vsel %vm118_vm1, %v81_v0, 0.0 }
  0x78   :  { %v122_v13 = vsel %vm85_vm0, %v120_v12, 0.0 }
  0x79   :  { %v94_v14 = vmul.f32 1.442695, %v92_v11  ;;  %123 = vadd.xlane.f32.xlu0 %v122_v13 }
  0x7b   :  { %206 = vpow2.f32 %v94_v14 }
  0x7d   :  { %v117_v15 = vpop.permute.xlu1 %116 }
  0x7e   :  { %v91_v16 = vpop.xlane.xlu0 %90  ;;  %vm119_vm2 = vcmp.eq.s32.totalorder %v111_v8, %v117_v15 }
  0x7f   :  { %v93_v17 = vsub.f32 %v82_v4, %v91_v16  ;;  %v121_v18 = vsel %vm119_vm2, %v82_v4, 0.0 }
  0x80   :  { %v125_v19 = vsel %vm85_vm0, %v121_v18, 0.0 }
  0x81   :  { %v207_v20 = vpop.eup %206  ;;  %v96_v21 = vmul.f32 1.442695, %v93_v17  ;;  %126 = vadd.xlane.f32.xlu1 %v125_v19 }
  0x82   :  { %v98_v22 = vsel %vm85_vm0, %v207_v20, 0.0 }
  0x83   :  { %208 = vpow2.f32 %v96_v21  ;;  %99 = vadd.xlane.f32.xlu2 %v98_v22 }
  0x89   :  { %v209_v23 = vpop.eup %208 }
  0x8a   :  { %v101_v24 = vsel %vm85_vm0, %v209_v23, 0.0 }
  0x8b   :  { %102 = vadd.xlane.f32.xlu2 %v101_v24 }
  0xec   :  { %v124_v29 = vpop.xlane.xlu0 %123 }
  0xf4   :  { %v127_v37 = vpop.xlane.xlu1 %126 }
  0xf6   :  { %v100_v25 = vpop.xlane.xlu2 %99 }
  0xf7   :  { %210 = vlog2.f32 %v100_v25 }
  0xfd   :  { %v211_v26 = vpop.eup %210 }
  0xfe   :  { %v105_v27 = vmul.f32 0.6931472, %v211_v26  ;;  %v103_v28 = vpop.xlane.xlu2 %102 }
  0xff   :  { %212 = vlog2.f32 %v103_v28 }
 0x100   :  { %v108_v30 = vadd.f32 %v105_v27, %v88_v10 }
 0x102   :  { %v128_v31 = vsub.f32 %v108_v30, %v124_v29 }
 0x104   :  { %v130_v32 = vsub.f32 0.0, %v128_v31 }
 0x105   :  { %v213_v33 = vpop.eup %212 }
 0x106   :  { %v107_v34 = vmul.f32 0.6931472, %v213_v33  ;;  %v132_v35 = vmul.f32 1.442695, %v130_v32 }
 0x108   :  { %v109_v36 = vadd.f32 %v107_v34, %v91_v16  ;;  %214 = vpow2.f32 %v132_v35 }
 0x10a   :  { %v129_v38 = vsub.f32 %v109_v36, %v127_v37 }
 0x10c   :  { %v131_v39 = vsub.f32 0.0, %v129_v38 }
 0x10e   :  { %v215_v40 = vpop.eup %214  ;;  %v134_v41 = vmul.f32 1.442695, %v131_v39 }
 0x10f   :  { %v136_v42 = vsub.f32 1.0, %v215_v40 }
 0x110   :  { %216 = vpow2.f32 %v134_v41 }
 0x111   :  { %v138_v43 = vmul.f32 %v136_v42, %v136_v42 }
 0x113   :  { %v140_v47 = vmul.f32 %v138_v43, %v128_v31 }
 0x115   :  { %v156_v49 = vsel %vm155_vm3, %v140_v47, 0.0 }
 0x116   :  { %v217_v44 = vpop.eup %216 }
 0x117   :  { %v137_v45 = vsub.f32 1.0, %v217_v44 }
 0x119   :  { %v139_v46 = vmul.f32 %v137_v45, %v137_v45 }
 0x11b   :  { %v141_v48 = vmul.f32 %v139_v46, %v129_v38 }
 0x11d   :  { %v157_v50 = vsel %vm155_vm3, %v141_v48, 0.0 }
 0x11e   :  { %v158_v51 = vadd.f32 %v157_v50, %v156_v49 }
 0x120   :  { %159 = vadd.xlane.f32.xlu2 %v158_v51 }
 0x193   :  { %v160_v52 = vpop.xlane.xlu2 %159 }
 0x194   :  { %v161_v53 = vrot.slane %v160_v52, 4 }
 0x196   :  { %v162_v54 = vadd.f32 %v161_v53, %v160_v52 }
 0x198   :  { %v163_v55 = vrot.slane %v162_v54, 2 }
 0x19a   :  { %v164_v56 = vadd.f32 %v163_v55, %v162_v54 }
 0x19c   :  { %v165_v57 = vrot.slane %v164_v56, 1 }
 0x19e   :  { %v166_v58 = vadd.f32 %v165_v57, %v164_v56 }
 0x1a0   :  { %199 = vpush %v166_v58 }
 0x1d1   :  { %s200_s20 = spop %199 }
 0x1d2   :  { %v168_v59 = vstv %s200_s20 }
 0x1d3   :  { %170 = vst [vmem:[#allocation2] sm:$0xff] %v168_v59 }
 0x1d4   :  { %181 = dma.vmem_to_hbm [thread:$0]  %s177_s1, 128, %s179_s19, [#allocation3]  }
 0x1d5   :  { %242 = dma.done.wait [#allocation3], 128  }
 0x1d6   :  { %243 = vsyncadd [#allocation3], 4294967168 }
 0x1d7   :  { %186 = vsyncpa [#allocation3], 1 }

</bundles_post_ra>
